<compile_context>
chip_gen: v7x
topology: tpu7x:2x2x1
jax: 0.10.0
libtpu: 0.0.40
codegen_flags: <defaults>
</compile_context>

<pallas_src>
import math

import jax
import jax.numpy as jnp
import numpy as np
from jax.experimental import pallas as pl
from jax.experimental.pallas import tpu as pltpu

N_COLORS = 30  # 28 reference colors + black + white (module's effective out_channels)
_EPS_FOLDED = 1e-8 / (765.0 * 765.0)

_COLOR_TABLE = np.array(
    [[185, 31, 87], [208, 47, 72], [221, 68, 59], [233, 91, 35], [230, 120, 0],
     [244, 157, 0], [241, 181, 0], [238, 201, 0], [210, 193, 0], [168, 187, 0],
     [88, 169, 29], [0, 161, 90], [0, 146, 110], [0, 133, 127], [0, 116, 136],
     [0, 112, 155], [0, 96, 156], [0, 91, 165], [26, 84, 165], [83, 74, 160],
     [112, 63, 150], [129, 55, 138], [143, 46, 124], [173, 46, 108],
     [255, 0, 0], [0, 255, 0], [0, 0, 255], [128, 128, 128]],
    dtype=np.float32)


def make_rgb_weights() -> jax.Array:
    """(30, 3) reference colors in [0, 1]: 28-color table + black + white."""
    table = jnp.asarray(_COLOR_TABLE, dtype=jnp.float32) / 255.0
    black = jnp.zeros((1, 3), jnp.float32)
    white = jnp.ones((1, 3), jnp.float32)
    return jnp.concatenate([table, black, white], axis=0)


def _round_up(x: int, m: int) -> int:
    return (x + m - 1) // m * m


def _cdiv(a: int, b: int) -> int:
    return (a + b - 1) // b


def _largest_divisor_leq(n: int, cap: int) -> int:
    cap = max(1, min(n, cap))
    for d in range(cap, 0, -1):
        if n % d == 0:
            return d
    return 1


def _lab_dist_kernel(scale_ref, w_ref, m_ref, o_ref):
    # scale_ref: SMEM (1, 3)              sqrt(coef_c) * 255 / 765 per RGB channel
    # w_ref:     VMEM (N_COLORS, 3)       reference colors, already pre-scaled
    # m_ref:     VMEM (Bt, 3, TILE_L)     per-window RGB means in [0, 1]
    # o_ref:     VMEM (Bt, N_COLORS, TILE_L)
    sr = scale_ref[0, 0]
    sg = scale_ref[0, 1]
    sb = scale_ref[0, 2]

    w = w_ref[...]                          # (N_COLORS, 3), pre-scaled in wrapper
    wr = w[:, 0:1]                          # (N_COLORS, 1) -> broadcast along lanes
    wg = w[:, 1:2]
    wb = w[:, 2:3]

    bt = m_ref.shape[0]
    for b in range(bt):                     # static unroll over packed batch slabs
        mb = m_ref[b]                       # (3, TILE_L)
        dr = mb[0:1, :] * sr - wr           # (N_COLORS, TILE_L)
        dg = mb[1:2, :] * sg - wg
        db = mb[2:3, :] * sb - wb
        s = dr * dr + dg * dg + db * db + _EPS_FOLDED
        o_ref[b] = jnp.sqrt(s).astype(o_ref.dtype)


def rgb_conv2d_forward(x, weights30, kernel_size, stride=1, padding=0,
                       max_tile_l=16384, target_lanes=16384):
    """Forward pass of RGB_Conv2d. x: (B, 3, H, W). Returns (B, 30, OH, OW)."""
    B, C, H, W = x.shape
    assert C == 3, "RGB_Conv2d expects 3 input channels"
    kh, kw = kernel_size if isinstance(kernel_size, (tuple, list)) else (kernel_size, kernel_size)
    OH = (H + 2 * padding - kh) // stride + 1
    OW = (W + 2 * padding - kw) // stride + 1
    L = OH * OW

    # ---- unfold + per-channel window mean (strided average pooling), in XLA ----
    xf = x.astype(jnp.float32)
    if padding:
        xf = jnp.pad(xf, ((0, 0), (0, 0), (padding, padding), (padding, padding)))
    sums = jax.lax.reduce_window(
        xf, 0.0, jax.lax.add,
        window_dimensions=(1, 1, kh, kw),
        window_strides=(1, 1, stride, stride),
        padding="VALID")
    means = (sums * (1.0 / (kh * kw))).reshape(B, 3, L)   # (B, 3, L), values in [0, 1]

    w30 = weights30.astype(jnp.float32)                   # (30, 3)

    # ---- global rmean over all window R-means and reference R values (x255 domain) ----
    n_vals = B * L + N_COLORS
    rmean = (jnp.sum(means[:, 0, :]) * 255.0 + jnp.sum(w30[:, 0]) * 255.0) / n_vals

    # Per-channel scales folding coef, the x255 and the /765 into one multiplier.
    coef = jnp.stack([2.0 + rmean / 256.0,
                      jnp.asarray(4.0, jnp.float32),
                      2.0 + (255.0 - rmean) / 256.0])
    scale = (jnp.sqrt(coef) * (255.0 / 765.0)).astype(jnp.float32)   # (3,)
    scale_smem = scale.reshape(1, 3)
    w_scaled = (w30 * scale[None, :]).astype(jnp.float32)            # (30, 3), tiny XLA op

    # ---- balanced, 128-aligned tiling of the window-position axis ----
    L128 = _round_up(L, 128)
    n_l = _cdiv(L128, max_tile_l)
    TILE_L = _round_up(_cdiv(L128, n_l), 128)
    L_pad = n_l * TILE_L                                  # padding bounded, not ~TILE_L
    if L_pad != L:
        means = jnp.pad(means, ((0, 0), (0, 0), (0, L_pad - L)))

    # ---- pack batch images per grid step when L is small (amortize step overhead) ----
    bt = _largest_divisor_leq(B, max(1, target_lanes // TILE_L))
    if n_l * (B // bt) < 2 and B > 1:
        # keep >=2 grid steps along a parallel axis so both v7x TensorCores get work
        bt = _largest_divisor_leq(B, _cdiv(B, 2))

    grid = (B // bt, n_l)

    out = pl.pallas_call(
        _lab_dist_kernel,
        out_shape=jax.ShapeDtypeStruct((B, N_COLORS, L_pad), x.dtype),
        grid=grid,
        in_specs=[
            pl.BlockSpec(memory_space=pltpu.MemorySpace.SMEM),             # scale (1, 3)
            pl.BlockSpec((N_COLORS, 3), lambda bi, li: (0, 0)),            # scaled ref colors
            pl.BlockSpec((bt, 3, TILE_L), lambda bi, li: (bi, 0, li)),     # window means
        ],
        out_specs=pl.BlockSpec((bt, N_COLORS, TILE_L), lambda bi, li: (bi, 0, li)),
        compiler_params=pltpu.CompilerParams(
            dimension_semantics=("parallel", "parallel"),
            vmem_limit_bytes=48 * 1024 * 1024),
    )(scale_smem, w_scaled, means)

    if L_pad != L:
        out = out[:, :, :L]
    return out.reshape(B, N_COLORS, OH, OW)


def rgb_conv2d_reference(x, weights30, kernel_size, stride=1, padding=0):
    """Pure-JAX port of the PyTorch forward (independent of the kernel path)."""
    B, C, H, W = x.shape
    kh, kw = kernel_size
    OH = (H + 2 * padding - kh) // stride + 1
    OW = (W + 2 * padding - kw) // stride + 1
    L = OH * OW

    xf = x.astype(jnp.float32)
    if padding:
        xf = jnp.pad(xf, ((0, 0), (0, 0), (padding, padding), (padding, padding)))
    acc = jnp.zeros((B, 3, OH, OW), jnp.float32)
    for i in range(kh):
        for j in range(kw):
            acc = acc + jax.lax.slice(
                xf, (0, 0, i, j),
                (B, 3, i + stride * (OH - 1) + 1, j + stride * (OW - 1) + 1),
                (1, 1, stride, stride))
    wm = (acc / (kh * kw)).reshape(B, 3, L).transpose(0, 2, 1)     # (B, L, 3)

    w = weights30.astype(jnp.float32)                              # (30, 3)
    R1 = wm[:, :, 0:1] * 255.0
    G1 = wm[:, :, 1:2] * 255.0
    B1 = wm[:, :, 2:3] * 255.0
    R2 = w[:, 0] * 255.0
    G2 = w[:, 1] * 255.0
    B2 = w[:, 2] * 255.0
    rmean = jnp.mean(jnp.concatenate([R1.reshape(-1), R2.reshape(-1)]))
    Rd, Gd, Bd = R1 - R2, G1 - G2, B1 - B2
    dist = jnp.sqrt((2.0 + rmean / 256.0) * Rd ** 2 + 4.0 * Gd ** 2
                    + (2.0 + (255.0 - rmean) / 256.0) * Bd ** 2 + 1e-08)
    res = dist / 765.0                                             # (B, L, 30)
    return res.transpose(0, 2, 1).reshape(B, N_COLORS, OH, OW).astype(x.dtype)


if __name__ == "__main__":
    key = jax.random.PRNGKey(0)
    w30 = make_rgb_weights()

    # Case 1: matches the module's typical usage (bt falls back to 1, 2 grid steps).
    B, C, H, W = 2, 3, 16, 16
    kernel_size = (4, 4)
    stride, padding = 2, 1                           # -> OH = OW = 8, out_channels = 30
    x = jax.random.uniform(key, (B, C, H, W), dtype=jnp.float32)
    out = rgb_conv2d_forward(x, w30, kernel_size, stride=stride, padding=padding)
    out = jax.block_until_ready(out)
    ref = rgb_conv2d_reference(x, w30, kernel_size, stride=stride, padding=padding)
    assert out.shape == (B, N_COLORS, 8, 8), out.shape
    assert jnp.allclose(out, ref, atol=1e-4, rtol=1e-4), float(jnp.max(jnp.abs(out - ref)))

    # Case 2: exercises the batch-packed path (bt > 1 images per grid step).
    key2 = jax.random.PRNGKey(1)
    B2, H2, W2 = 4, 12, 12
    ks2, st2, pd2 = (3, 3), 1, 0                     # -> OH = OW = 10
    x2 = jax.random.uniform(key2, (B2, 3, H2, W2), dtype=jnp.float32)
    out2 = rgb_conv2d_forward(x2, w30, ks2, stride=st2, padding=pd2)
    out2 = jax.block_until_ready(out2)
    ref2 = rgb_conv2d_reference(x2, w30, ks2, stride=st2, padding=pd2)
    assert out2.shape == (B2, N_COLORS, 10, 10), out2.shape
    assert jnp.allclose(out2, ref2, atol=1e-4, rtol=1e-4), float(jnp.max(jnp.abs(out2 - ref2)))

    print("KERNEL_OK")
</pallas_src>

<mosaic_0001>
module attributes {stable_mosaic.version = 11 : i64} {
  func.func @_lab_dist_kernel(%arg0: i32, %arg1: i32, %arg2: memref<1x3xf32, #tpu.memory_space<smem>>, %arg3: memref<30x3xf32, #tpu.memory_space<vmem>>, %arg4: memref<1x3x128xf32, #tpu.memory_space<vmem>>, %arg5: memref<1x30x128xf32, #tpu.memory_space<vmem>>) attributes {dimension_semantics = [#tpu.dimension_semantics<parallel>, #tpu.dimension_semantics<parallel>], iteration_bounds = array<i64: 2, 1>, scalar_prefetch = 0 : i64, scratch_operands = 0 : i64, tpu.core_type = #tpu.core_type<tc>, window_params = [{transform_indices = @transform_0, window_bounds = array<i64: 1, 3>}, {pipeline_mode = #tpu.pipeline_mode<synchronous>, transform_indices = @transform_1, window_bounds = array<i64: 30, 3>}, {transform_indices = @transform_2, window_bounds = array<i64: 1, 3, 128>}, {transform_indices = @transform_3, window_bounds = array<i64: 1, 30, 128>}]} {
    %c0 = arith.constant 0 : index
    %c0_0 = arith.constant 0 : index
    %0 = memref.load %arg2[%c0, %c0_0] : memref<1x3xf32, #tpu.memory_space<smem>>
    %c0_1 = arith.constant 0 : index
    %c1 = arith.constant 1 : index
    %1 = memref.load %arg2[%c0_1, %c1] : memref<1x3xf32, #tpu.memory_space<smem>>
    %c0_2 = arith.constant 0 : index
    %c2 = arith.constant 2 : index
    %2 = memref.load %arg2[%c0_2, %c2] : memref<1x3xf32, #tpu.memory_space<smem>>
    %c0_3 = arith.constant 0 : index
    %c0_4 = arith.constant 0 : index
    %3 = vector.load %arg3[%c0_3, %c0_4] : memref<30x3xf32, #tpu.memory_space<vmem>>, vector<30x3xf32>
    %4 = vector.extract_strided_slice %3 {offsets = [0, 0], sizes = [30, 1], strides = [1, 1]} : vector<30x3xf32> to vector<30x1xf32>
    %5 = vector.extract_strided_slice %3 {offsets = [0, 1], sizes = [30, 1], strides = [1, 1]} : vector<30x3xf32> to vector<30x1xf32>
    %6 = vector.extract_strided_slice %3 {offsets = [0, 2], sizes = [30, 1], strides = [1, 1]} : vector<30x3xf32> to vector<30x1xf32>
    %c0_5 = arith.constant 0 : index
    %c0_6 = arith.constant 0 : index
    %c0_7 = arith.constant 0 : index
    %7 = vector.load %arg4[%c0_5, %c0_6, %c0_7] : memref<1x3x128xf32, #tpu.memory_space<vmem>>, vector<1x3x128xf32>
    %8 = vector.shape_cast %7 : vector<1x3x128xf32> to vector<3x128xf32>
    %9 = vector.extract_strided_slice %8 {offsets = [0, 0], sizes = [1, 128], strides = [1, 1]} : vector<3x128xf32> to vector<1x128xf32>
    %10 = vector.broadcast %0 : f32 to vector<1x128xf32>
    %11 = arith.mulf %9, %10 : vector<1x128xf32>
    %12 = vector.broadcast %11 : vector<1x128xf32> to vector<30x128xf32>
    %13 = vector.broadcast %4 : vector<30x1xf32> to vector<30x128xf32>
    %14 = arith.subf %12, %13 : vector<30x128xf32>
    %15 = vector.extract_strided_slice %8 {offsets = [1, 0], sizes = [1, 128], strides = [1, 1]} : vector<3x128xf32> to vector<1x128xf32>
    %16 = vector.broadcast %1 : f32 to vector<1x128xf32>
    %17 = arith.mulf %15, %16 : vector<1x128xf32>
    %18 = vector.broadcast %17 : vector<1x128xf32> to vector<30x128xf32>
    %19 = vector.broadcast %5 : vector<30x1xf32> to vector<30x128xf32>
    %20 = arith.subf %18, %19 : vector<30x128xf32>
    %21 = vector.extract_strided_slice %8 {offsets = [2, 0], sizes = [1, 128], strides = [1, 1]} : vector<3x128xf32> to vector<1x128xf32>
    %22 = vector.broadcast %2 : f32 to vector<1x128xf32>
    %23 = arith.mulf %21, %22 : vector<1x128xf32>
    %24 = vector.broadcast %23 : vector<1x128xf32> to vector<30x128xf32>
    %25 = vector.broadcast %6 : vector<30x1xf32> to vector<30x128xf32>
    %26 = arith.subf %24, %25 : vector<30x128xf32>
    %27 = arith.mulf %14, %14 : vector<30x128xf32>
    %28 = arith.mulf %20, %20 : vector<30x128xf32>
    %29 = arith.addf %27, %28 : vector<30x128xf32>
    %30 = arith.mulf %26, %26 : vector<30x128xf32>
    %31 = arith.addf %29, %30 : vector<30x128xf32>
    %cst = arith.constant 1.70874447E-14 : f32
    %32 = vector.broadcast %cst : f32 to vector<30x128xf32>
    %33 = arith.addf %31, %32 : vector<30x128xf32>
    %34 = math.sqrt %33 : vector<30x128xf32>
    %c0_8 = arith.constant 0 : index
    %c0_9 = arith.constant 0 : index
    %c0_10 = arith.constant 0 : index
    %35 = vector.load %arg5[%c0_8, %c0_9, %c0_10] : memref<1x30x128xf32, #tpu.memory_space<vmem>>, vector<1x30x128xf32>
    %36 = vector.shape_cast %35 : vector<1x30x128xf32> to vector<30x128xf32>
    %37 = vector.shape_cast %34 : vector<30x128xf32> to vector<1x30x128xf32>
    tpu.vector_store %arg5[%c0_8, %c0_9, %c0_10], %37 {strides = array<i32>} : memref<1x30x128xf32, #tpu.memory_space<vmem>>, vector<1x30x128xf32>,
    return
  }
  func.func @transform_0(%arg0: i32, %arg1: i32) -> (i32, i32) {
    %c0_i32 = arith.constant 0 : i32
    %c0_i32_0 = arith.constant 0 : i32
    %c0_i32_1 = arith.constant 0 : i32
    return %c0_i32, %c0_i32_0 : i32, i32
  }
  func.func @transform_1(%arg0: i32, %arg1: i32) -> (i32, i32) {
    %c0_i32 = arith.constant 0 : i32
    %c0_i32_0 = arith.constant 0 : i32
    %c0_i32_1 = arith.constant 0 : i32
    return %c0_i32, %c0_i32_0 : i32, i32
  }
  func.func @transform_2(%arg0: i32, %arg1: i32) -> (i32, i32, i32) {
    %c0_i32 = arith.constant 0 : i32
    %c0_i32_0 = arith.constant 0 : i32
    return %arg0, %c0_i32, %arg1 : i32, i32, i32
  }
  func.func @transform_3(%arg0: i32, %arg1: i32) -> (i32, i32, i32) {
    %c0_i32 = arith.constant 0 : i32
    %c0_i32_0 = arith.constant 0 : i32
    return %arg0, %c0_i32, %arg1 : i32, i32, i32
  }
}

</mosaic_0001>

<bundles_post_ra>
// kernel: tpu_custom_call.1
= control target key start
LH: loop header
LB: loop body
LE: loop exit
PB: predicated region body
PF: predicated region fallthrough
CT: control target
= control target key end

     0   :  { %8 = vsyncpa [#allocation3], 0  ;;  %s586_s12 = smov 0   ;;  %s588_s13 = smov 0   ;;  %s661_s0 = inlined_call_operand.vmem [shape: f32[1,3], index: 0, kind: input, shape index: {}]   ;;  %s662_s1 = inlined_call_operand.vmem [shape: f32[30,3], index: 1, kind: input, shape index: {}]   ;;  %s663_s2 = inlined_call_operand.vmem [shape: f32[2,3,128], index: 2, kind: input, shape index: {}]   ;;  %s664_s3 = inlined_call_operand.vmem [shape: f32[2,30,128], index: 3, kind: output, shape index: {}]  }
   0x1   :  { %s590_s14 = smov 0  }
   0x2 LB: > { %s452_s15 = sadd.s32 4294967295, %s560_s14   ;;  %s26_s16 = sadd.s32 1, %s556_s13  ;;  %s560_s14 = sphi %s590_s14, %s14_s14   ;;  %s556_s13 = sphi %s588_s13, %s668_s13   ;;  %s552_s12 = sphi %s586_s12, %s667_s12  }
   0x3   : > { %p28_p0 = scmp.ge.s32.totalorder %s26_s16, 2  ;;  %p454_p1 = scmp.ge.s32.totalorder %s560_s14, 1 }
   0x4   : > { %p129_p2 = scmp.lt.s32.totalorder %s560_s14, 3  ;;  %p611_p4 = scmp.eq.s32.totalorder %s452_s15, 0 }
   0x5   : > { %s670_s16 = smov (%p28_p0, %s26_s16), 0  ;;  %s142_s21 = sshll.u32 %s661_s0, 4  ;;  %s143_s21 = int_to_ptr.vmem [resolvable:$true] %s142_s21 }
   0x6   : > { %p607_p3 = pnand %p454_p1, %p129_p2  ;;  %s519_s22 = scalar_lea.vmem %s143_s21, 16 }
   0x7   : > { %p520_p7 = scmp.ne.s32.totalorder %s143_s21, %s519_s22  ;;  %p527_p11 = scmp.lt.s32.totalorder %s143_s21, %s143_s21 }
   0x8   : > { %p471_p5 = pneg %p607_p3  ;;  %p528_p12 = scmp.lt.s32.totalorder %s519_s22, %s519_s22 }
   0xa   : > { %p472_p6 = pnand %p611_p4, %p471_p5  ;;  %p529_p13 = por %p528_p12, %p527_p11 }
   0xc   : > { %p521_p8 = pneg %p472_p6 }
   0xe   : > { %p522_p9 = pnand %p521_p8, %p520_p7 }
  0x10   : > { %p523_p10 = pneg %p522_p9 }
  0x12   : > { %p530_p0 = pnand %p529_p13, %p523_p10 }
  0x14   : > { %533 = shalt.err (!%p530_p0)
}
  0x15   : > { %s562_s23 = smov [#allocation2]   ;;  %168 = sbr.rel (%p607_p3) target bundleno = 211 (0xd3), region = 32 }
  0x16   : > { %474 = dma.vmem_to_smem (!%p472_p6), %s143_s21, 16, %s562_s23, [#allocation3]  }
  0x1c   : > { %547 = dma.done.wait (%p611_p4), [#allocation3], 16  }
  0x1d   : > { %549 = vsyncadd (%p611_p4), [#allocation3], 4294967280 }
  0x1e   : > { %174 = sfence }
  0x1f   : > { %v218_v0 = vld [vmem:[%s662_s1 + $0x10] sm:$0xff]  ;;  %v216_v1 = vld [vmem:[%s662_s1] sm:$0xff]  ;;  %v563_v2 = vmov 0   ;;  %v219_v3 = vld [vmem:[%s662_s1 + $0x18] sm:$0x3f]  ;;  %v564_v5 = vmov 1   ;;  %v223_v7 = vlaneseq }
  0x20   : > { %506 = vset.pattern.permute.xlu1 %v563_v2  ;;  %505 = vset.pattern.permute.xlu0 %v563_v2  ;;  %v217_v4 = vld [vmem:[%s662_s1 + $0x8] sm:$0xff]  ;;  %v565_v6 = vmov 2   ;;  %p198_p1 = scmp.lt.s32.totalorder %s552_s12, 1  ;;  %s462_s5 = sld [smem:[#allocation2 + $0x1]] }
  0x21   : > { %239 = vperm.xlu1 %506, %v218_v0   ;;  %229 = vperm.xlu0 %505, %v216_v1   ;;  %s213_s6 = sld [smem:[#allocation2]]  ;;  %s463_s8 = sld [smem:[#allocation2 + $0x2]]  ;;  %v224_v11 = vshrl.u32 %v223_v7, 7 }
  0x22   : > { %s672_s12 = smov (!%p198_p1, %s552_s12), 1 }
  0x23   : > { %s459_s7 = sshll.u32 %s672_s12, 2  ;;  %v255_v16 = vsub.s32 1, %v224_v11  ;;  %v225_v18 = vsub.s32 0, %v224_v11  ;;  %v281_v25 = vsub.s32 2, %v224_v11  ;;  %s466_s15 = sshll.u32 %s672_s12, 5 }
  0x24   : > { %s204_s11 = scalar_lea.vmem %s663_s2, %s459_s7  ;;  %s212_s19 = scalar_lea.vmem %s664_s3, %s466_s15 }
  0x25   : > { %244 = vperm.xlu1 %506, %v219_v3   ;;  %234 = vperm.xlu0 %505, %v217_v4   ;;  %v220_v12 = vld [vmem:[%s204_s11] sm:$0x7] }
  0x26   : > { %v251_v10 = vstv %s462_s5 }
  0x27   : > { %v221_v13 = vstv %s213_s6  ;;  %v252_v17 = vmul.f32 %v251_v10, %v220_v12  ;;  %v277_v20 = vstv %s463_s8 }
  0x28   : > { %v222_v19 = vmul.f32 %v221_v13, %v220_v12  ;;  %v278_v26 = vmul.f32 %v277_v20, %v220_v12 }
  0x29   : > { %508 = vset.pattern.permute.xlu1 %v564_v5  ;;  %507 = vset.pattern.permute.xlu0 %v564_v5  ;;  %v256_v22 = vrot.slane %v252_v17, %v255_v16 }
  0x2a   : > { %262 = vperm.xlu1 %508, %v217_v4   ;;  %258 = vperm.xlu0 %507, %v216_v1   ;;  %v226_v24 = vrot.slane %v222_v19, %v225_v18  ;;  %v282_v33 = vrot.slane %v278_v26, %v281_v25 }
  0x2e   : > { %266 = vperm.xlu1 %508, %v218_v0   ;;  %270 = vperm.xlu0 %507, %v219_v3  }
  0x32   : > { %509 = vset.pattern.permute.xlu1 %v565_v6  ;;  %510 = vset.pattern.permute.xlu0 %v565_v6 }
  0x33   : > { %284 = vperm.xlu1 %509, %v216_v1   ;;  %288 = vperm.xlu0 %510, %v217_v4  }
  0x37   : > { %292 = vperm.xlu1 %509, %v218_v0  }
  0x3b   : > { %296 = vperm.xlu1 %509, %v219_v3  }
  0xa0   : > { %v240_v8 = vpop.permute.xlu1 %239  ;;  %v230_v9 = vpop.permute.xlu0 %229 }
  0xa1   : > { %v247_v27 = vsub.f32 %v226_v24, %v230_v9  ;;  %v249_v43 = vsub.f32 %v226_v24, %v240_v8 }
  0xa3   : > { %v303_v34 = vmul.f32 %v247_v27, %v247_v27  ;;  %v305_v54 = vmul.f32 %v249_v43, %v249_v43 }
  0xa4   : > { %v245_v14 = vpop.permute.xlu1 %244  ;;  %v235_v15 = vpop.permute.xlu0 %234 }
  0xa5   : > { %v248_v28 = vsub.f32 %v226_v24, %v235_v15  ;;  %v250_v58 = vsub.f32 %v226_v24, %v245_v14 }
  0xa7   : > { %v304_v35 = vmul.f32 %v248_v28, %v248_v28  ;;  %v306_v0 = vmul.f32 %v250_v58, %v250_v58 }
  0xa9   : > { %v263_v21 = vpop.permute.xlu1 %262  ;;  %v259_v23 = vpop.permute.xlu0 %258 }
  0xaa   : > { %v274_v29 = vsub.f32 %v256_v22, %v263_v21  ;;  %v273_v30 = vsub.f32 %v256_v22, %v259_v23 }
  0xac   : > { %v308_v36 = vmul.f32 %v274_v29, %v274_v29  ;;  %v307_v37 = vmul.f32 %v273_v30, %v273_v30 }
  0xad   : > { %v267_v31 = vpop.permute.xlu1 %266  ;;  %v271_v32 = vpop.permute.xlu0 %270 }
  0xae   : > { %v275_v40 = vsub.f32 %v256_v22, %v267_v31  ;;  %v312_v44 = vadd.f32 %v308_v36, %v304_v35  ;;  %v311_v45 = vadd.f32 %v307_v37, %v303_v34  ;;  %v276_v53 = vsub.f32 %v256_v22, %v271_v32 }
  0xb0   : > { %v309_v49 = vmul.f32 %v275_v40, %v275_v40  ;;  %v310_v61 = vmul.f32 %v276_v53, %v276_v53 }
  0xb2   : > { %v285_v38 = vpop.permute.xlu1 %284  ;;  %v289_v39 = vpop.permute.xlu0 %288  ;;  %v313_v60 = vadd.f32 %v309_v49, %v305_v54  ;;  %v314_v3 = vadd.f32 %v310_v61, %v306_v0 }
  0xb3   : > { %v299_v41 = vsub.f32 %v282_v33, %v285_v38  ;;  %v300_v42 = vsub.f32 %v282_v33, %v289_v39 }
  0xb5   : > { %v315_v46 = vmul.f32 %v299_v41, %v299_v41  ;;  %v316_v47 = vmul.f32 %v300_v42, %v300_v42 }
  0xb6   : > { %v293_v48 = vpop.permute.xlu1 %292 }
  0xb7   : > { %v319_v50 = vadd.f32 %v315_v46, %v311_v45  ;;  %v320_v51 = vadd.f32 %v316_v47, %v312_v44  ;;  %v301_v52 = vsub.f32 %v282_v33, %v293_v48 }
  0xb9   : > { %v323_v55 = vadd.f32 1.7087445e-14, %v319_v50  ;;  %v324_v56 = vadd.f32 1.7087445e-14, %v320_v51  ;;  %v317_v57 = vmul.f32 %v301_v52, %v301_v52 }
  0xba   : > { %v297_v59 = vpop.permute.xlu1 %296 }
  0xbb   : > { %511 = vrsqrt.f32 %v323_v55  ;;  %v321_v62 = vadd.f32 %v317_v57, %v313_v60  ;;  %v302_v63 = vsub.f32 %v282_v33, %v297_v59  ;;  %vm329_vm0 = vcmp.eq.f32.partialorder %v323_v55, inf }
  0xbc   : > { %513 = vrsqrt.f32 %v324_v56  ;;  %v332_v9 = vand.u32 2147483648, %v323_v55  ;;  %vm331_vm1 = vcmp.eq.f32.partialorder %v323_v55, 0.0  ;;  %vm336_vm2 = vcmp.eq.f32.partialorder %v324_v56, inf }
  0xbd   : > { %v325_v1 = vadd.f32 1.7087445e-14, %v321_v62  ;;  %v318_v2 = vmul.f32 %v302_v63, %v302_v63  ;;  %v339_v12 = vand.u32 2147483648, %v324_v56  ;;  %vm338_vm3 = vcmp.eq.f32.partialorder %v324_v56, 0.0 }
  0xbf   : > { %515 = vrsqrt.f32 %v325_v1  ;;  %v322_v4 = vadd.f32 %v318_v2, %v314_v3  ;;  %vm343_vm4 = vcmp.eq.f32.partialorder %v325_v1, inf  ;;  %v346_v18 = vand.u32 2147483648, %v325_v1 }
  0xc0   : > { %vm345_vm5 = vcmp.eq.f32.partialorder %v325_v1, 0.0 }
  0xc1   : > { %v326_v5 = vadd.f32 1.7087445e-14, %v322_v4 }
  0xc3   : > { %517 = vrsqrt.f32 %v326_v5  ;;  %vm350_vm6 = vcmp.eq.f32.partialorder %v326_v5, inf  ;;  %v353_v23 = vand.u32 2147483648, %v326_v5  ;;  %vm352_vm7 = vcmp.eq.f32.partialorder %v326_v5, 0.0 }
  0xc5   : > { %v512_v6 = vpop.eup %511 }
  0xc6   : > { %v514_v7 = vpop.eup %513  ;;  %v328_v8 = vmul.f32 %v512_v6, %v323_v55 }
  0xc7   : > { %v335_v10 = vmul.f32 %v514_v7, %v324_v56 }
  0xc8   : > { %v330_v11 = vsel %vm329_vm0, %v323_v55, %v328_v8 }
  0xc9   : > { %v333_v13 = vsel %vm331_vm1, %v332_v9, %v330_v11  ;;  %v337_v14 = vsel %vm336_vm2, %v324_v56, %v335_v10  ;;  %v516_v16 = vpop.eup %515 }
  0xca   : > { %355 = vst [vmem:[%s212_s19] sm:$0xff] %v333_v13  ;;  %v340_v15 = vsel %vm338_vm3, %v339_v12, %v337_v14  ;;  %v342_v17 = vmul.f32 %v516_v16, %v325_v1 }
  0xcb   : > { %356 = vst [vmem:[%s212_s19 + $0x8] sm:$0xff] %v340_v15 }
  0xcc   : > { %v344_v19 = vsel %vm343_vm4, %v325_v1, %v342_v17 }
  0xcd   : > { %v347_v20 = vsel %vm345_vm5, %v346_v18, %v344_v19  ;;  %v518_v21 = vpop.eup %517 }
  0xce   : > { %357 = vst [vmem:[%s212_s19 + $0x10] sm:$0xff] %v347_v20  ;;  %v349_v22 = vmul.f32 %v518_v21, %v326_v5 }
  0xd0   : > { %v351_v24 = vsel %vm350_vm6, %v326_v5, %v349_v22 }
  0xd1   : > { %v354_v25 = vsel %vm352_vm7, %v353_v23, %v351_v24 }
  0xd2   : > { %358 = vst [vmem:[%s212_s19 + $0x18] sm:$0x3f] %v354_v25 }
  0xd3 PF: > { %s14_s14 = sadd.s32 1, %s560_s14   ;;  %s667_s12 = smov %s556_s13 }
  0xd4   : > { %p11_p2 = scmp.ge.s32.totalorder %s14_s14, 4   ;;  %s668_s13 = smov %s670_s16 }
  0xd6   :  { %13 = sbr.rel (!%p11_p2) target bundleno = 2 (0x2), region = 67 }
  0xdd   :  { %386 = vsyncpa [#allocation3], 1 }
  0xde   :  { %388 = vsyncpa [#allocation3 + $0x1], 1 }

</bundles_post_ra>
